<compile_context>
chip_gen: v7x
topology: tpu7x:2x2x1
jax: 0.10.0
libtpu: 0.0.40
codegen_flags: <defaults>
</compile_context>

<pallas_src>
import jax
import jax.numpy as jnp
from jax import lax
from jax.experimental import pallas as pl
from jax.experimental.pallas import tpu as pltpu


def _self_attentive_kernel(tok_ref, hid_ref, w1_ref, w2_ref,
                           att_ref, alpha_ref):
    # tok_ref   : (TB, 1, S) int32  scrambled token ids (transpose+reshape of inputs)
    # hid_ref   : (TB, S, H) bf16   GPT hidden states for this batch block
    # w1_ref    : (H, A)     bf16   ws1 weight, transposed to (in, out)
    # w2_ref    : (HOPS, A)  bf16   ws2 weight in original (out, in) layout
    # att_ref   : (TB, HOPS, H) f32 bmm(alphas, output)
    # alpha_ref : (TB, HOPS, S) f32 attention weights
    TB, S, H = hid_ref.shape
    HOPS = w2_ref.shape[0]

    hid = hid_ref[...]                                   # (TB, S, H) bf16
    hid2d = hid.reshape(TB * S, H)                       # big-M MXU matmul

    # hbar = tanh(ws1(drop(x)))  (dropout == identity at eval);
    # matmul on the MXU in bf16, tanh on the VPU in f32.
    hbar = jnp.tanh(
        jnp.dot(hid2d, w1_ref[...],
                preferred_element_type=jnp.float32))     # (TB*S, A) f32

    # Hops-major scores: (HOPS, TB*S) = ws2 @ hbar^T.  Keeps S on the lane axis
    # for the softmax reduction; no (S, HOPS) intermediate, no lane transpose.
    pre = lax.dot_general(
        w2_ref[...], hbar.astype(jnp.bfloat16),
        dimension_numbers=(((1,), (1,)), ((), ())),
        preferred_element_type=jnp.float32)              # (HOPS, TB*S)
    pre = pre.reshape(HOPS, TB, S)

    # penalized_alphas = alphas + (-10000) * (concatenated_inp == 0)
    # (mask computed in-kernel from int32 ids; no f32 mask array in HBM)
    tok = tok_ref[...].reshape(TB, S)
    neg = jnp.where(tok == 0, -10000.0, 0.0)             # (TB, S) f32
    pen = pre + neg                                      # -> (HOPS, TB, S)

    # softmax over the sequence (lane) axis; reciprocal goes to the EUP.
    m = jnp.max(pen, axis=-1, keepdims=True)
    e = jnp.exp(pen - m)
    alphas = e * pl.reciprocal(jnp.sum(e, axis=-1, keepdims=True), approx=True)

    alphas_bh = jnp.transpose(alphas, (1, 0, 2))         # (TB, HOPS, S) f32
    alpha_ref[...] = alphas_bh

    # torch.bmm(alphas, output)
    att_ref[...] = jnp.einsum(
        "bhs,bsd->bhd", alphas_bh.astype(jnp.bfloat16), hid,
        preferred_element_type=jnp.float32)              # (TB, HOPS, H) f32


def _pick_block_batch(B, S, H, hops, budget_bytes=16 << 20):
    """Largest divisor of B whose double-buffered per-step block footprint fits
    a conservative (v7x-safe) VMEM budget, preferring >=2 grid steps so v7x's
    two TensorCores both get work."""
    def footprint(tb):
        hid = tb * S * H * 2            # bf16 hidden-state block
        tok = tb * S * 4                # int32 token block
        att = tb * hops * H * 4         # f32 attended block
        alp = tb * hops * S * 4         # f32 alphas block
        return 2 * (hid + tok + att + alp)   # double-buffered pipeline
    divisors = [d for d in range(1, B + 1) if B % d == 0]
    fitting = [d for d in divisors if footprint(d) <= budget_bytes] or [1]
    multi_step = [d for d in fitting if B // d >= 2]
    return max(multi_step) if multi_step else max(fitting)


def self_attentive_encoder(inputs, output, ws1, ws2, attention_hops):
    """inputs: (B, S) int32 token ids; output: (B, S, H) float GPT hidden states.
    ws1: (A, H) Linear weight (out, in); ws2: (HOPS, A) Linear weight (out, in)."""
    B, S, H = output.shape
    A = ws1.shape[0]
    HOPS = attention_hops
    assert ws2.shape == (HOPS, A)

    # Reproduce the original (scrambling) mask-source construction exactly:
    #   transposed = inputs.transpose(0, 1).contiguous().view(B, 1, S)
    # kept as int32; the `== 0` mask itself is computed inside the kernel.
    tok = jnp.transpose(inputs, (1, 0)).reshape(B, 1, S).astype(jnp.int32)

    hid = output.astype(jnp.bfloat16)                        # (B, S, H)
    w1_t = jnp.transpose(ws1, (1, 0)).astype(jnp.bfloat16)   # (H, A)
    w2_b = ws2.astype(jnp.bfloat16)                          # (HOPS, A)

    TB = _pick_block_batch(B, S, H, HOPS)
    grid = (B // TB,)

    grid_spec = pltpu.PrefetchScalarGridSpec(
        num_scalar_prefetch=0,
        grid=grid,
        in_specs=[
            pl.BlockSpec((TB, 1, S), lambda b: (b, 0, 0)),
            pl.BlockSpec((TB, S, H), lambda b: (b, 0, 0)),
            pl.BlockSpec((H, A), lambda b: (0, 0)),
            pl.BlockSpec((HOPS, A), lambda b: (0, 0)),
        ],
        out_specs=[
            pl.BlockSpec((TB, HOPS, H), lambda b: (b, 0, 0)),
            pl.BlockSpec((TB, HOPS, S), lambda b: (b, 0, 0)),
        ],
    )

    attended, alphas = pl.pallas_call(
        _self_attentive_kernel,
        out_shape=(
            jax.ShapeDtypeStruct((B, HOPS, H), jnp.float32),
            jax.ShapeDtypeStruct((B, HOPS, S), jnp.float32),
        ),
        grid_spec=grid_spec,
        compiler_params=pltpu.CompilerParams(
            dimension_semantics=("parallel",),
            vmem_limit_bytes=40 * 1024 * 1024),
    )(tok, hid, w1_t, w2_b)
    return attended, alphas


def _reference(inputs, output, ws1, ws2, hops):
    """Pure-JAX f32 reference mirroring the PyTorch forward, for sanity check."""
    B, S, H = output.shape
    emb = output.reshape(-1, H)
    transformed = jnp.transpose(inputs, (1, 0)).reshape(B, 1, S)
    concat = jnp.concatenate([transformed] * hops, axis=1)        # (B, HOPS, S)
    hbar = jnp.tanh(emb @ ws1.T)
    al = (hbar @ ws2.T).reshape(B, S, hops)
    al = jnp.transpose(al, (0, 2, 1))
    pen = al + (-10000.0) * (concat == 0).astype(jnp.float32)
    al = jax.nn.softmax(pen.reshape(-1, S), axis=1).reshape(B, hops, S)
    return jnp.einsum("bhs,bsd->bhd", al, output), al


if __name__ == "__main__":
    # Small config consistent with the module:
    B, S = 2, 8                 # batch, sequence length
    H = 32                      # gpt_config.output_size
    A = 16                      # config['attention-unit']
    HOPS = 4                    # config['attention-hops']
    VOCAB = 50

    key = jax.random.PRNGKey(0)
    k_tok, k_emb, k_w1, k_w2 = jax.random.split(key, 4)

    # Token ids (include some zeros so the padding mask matters).
    inputs = jax.random.randint(k_tok, (B, S), 0, VOCAB, dtype=jnp.int32)
    inputs = inputs.at[:, -2:].set(0)

    # Simulated GPT backbone: deterministic embedding lookup (stands in for gpt(inputs)[0]).
    emb_table = jax.random.normal(k_emb, (VOCAB, H), dtype=jnp.float32) * 0.5
    output = emb_table[inputs]                                    # (B, S, H)

    # Deterministic parameter init (nn.Linear weight shapes: (out, in), bias=False).
    ws1 = jax.random.normal(k_w1, (A, H), dtype=jnp.float32) * 0.1
    ws2 = jax.random.normal(k_w2, (HOPS, A), dtype=jnp.float32) * 0.1

    attended, alphas = self_attentive_encoder(inputs, output, ws1, ws2, HOPS)
    jax.block_until_ready(attended)
    jax.block_until_ready(alphas)

    ref_att, ref_alphas = _reference(inputs, output, ws1, ws2, HOPS)
    assert attended.shape == (B, HOPS, H) and alphas.shape == (B, HOPS, S)
    # bf16 MXU inputs + approx reciprocal -> loosened tolerances vs f32 reference.
    assert jnp.allclose(attended, ref_att, atol=2e-2, rtol=2e-2)
    assert jnp.allclose(alphas, ref_alphas, atol=2e-2, rtol=2e-2)

    print("KERNEL_OK")
</pallas_src>

<mosaic_0001>
module attributes {stable_mosaic.version = 11 : i64} {
  func.func @_self_attentive_kernel(%arg0: i32, %arg1: memref<1x1x8xi32, #tpu.memory_space<vmem>>, %arg2: memref<1x8x32xbf16, #tpu.memory_space<vmem>>, %arg3: memref<32x16xbf16, #tpu.memory_space<vmem>>, %arg4: memref<4x16xbf16, #tpu.memory_space<vmem>>, %arg5: memref<1x4x32xf32, #tpu.memory_space<vmem>>, %arg6: memref<1x4x8xf32, #tpu.memory_space<vmem>>) attributes {dimension_semantics = [#tpu.dimension_semantics<parallel>], iteration_bounds = array<i64: 2>, scalar_prefetch = 0 : i64, scratch_operands = 0 : i64, tpu.core_type = #tpu.core_type<tc>, window_params = [{transform_indices = @transform_0, window_bounds = array<i64: 1, 1, 8>}, {transform_indices = @transform_1, window_bounds = array<i64: 1, 8, 32>}, {pipeline_mode = #tpu.pipeline_mode<synchronous>, transform_indices = @transform_2, window_bounds = array<i64: 32, 16>}, {pipeline_mode = #tpu.pipeline_mode<synchronous>, transform_indices = @transform_3, window_bounds = array<i64: 4, 16>}, {transform_indices = @transform_4, window_bounds = array<i64: 1, 4, 32>}, {transform_indices = @transform_5, window_bounds = array<i64: 1, 4, 8>}]} {
    %c0 = arith.constant 0 : index
    %c0_0 = arith.constant 0 : index
    %c0_1 = arith.constant 0 : index
    %0 = vector.load %arg2[%c0, %c0_0, %c0_1] : memref<1x8x32xbf16, #tpu.memory_space<vmem>>, vector<1x8x32xbf16>
    %1 = vector.shape_cast %0 : vector<1x8x32xbf16> to vector<8x32xbf16>
    %c0_2 = arith.constant 0 : index
    %c0_3 = arith.constant 0 : index
    %2 = vector.load %arg3[%c0_2, %c0_3] : memref<32x16xbf16, #tpu.memory_space<vmem>>, vector<32x16xbf16>
    %cst = arith.constant dense<0.000000e+00> : vector<8x16xf32>
    %3 = tpu.matmul %1, %2, %cst {dimension_numbers = #tpu.dot_dimension_numbers<[1], [0], [0], [1], [0, 0, 1, 1], [], []>} : vector<8x32xbf16>, vector<32x16xbf16>, vector<8x16xf32> -> vector<8x16xf32>
    %4 = math.tanh %3 : vector<8x16xf32>
    %c0_4 = arith.constant 0 : index
    %c0_5 = arith.constant 0 : index
    %5 = vector.load %arg4[%c0_4, %c0_5] : memref<4x16xbf16, #tpu.memory_space<vmem>>, vector<4x16xbf16>
    %6 = arith.truncf %4 : vector<8x16xf32> to vector<8x16xbf16>
    %cst_6 = arith.constant dense<0.000000e+00> : vector<4x8xf32>
    %7 = tpu.matmul %5, %6, %cst_6 {dimension_numbers = #tpu.dot_dimension_numbers<[1], [1], [0], [0], [0, 0, 1, 0], [], []>} : vector<4x16xbf16>, vector<8x16xbf16>, vector<4x8xf32> -> vector<4x8xf32>
    %8 = vector.shape_cast %7 : vector<4x8xf32> to vector<4x1x8xf32>
    %c0_7 = arith.constant 0 : index
    %c0_8 = arith.constant 0 : index
    %c0_9 = arith.constant 0 : index
    %9 = vector.load %arg1[%c0_7, %c0_8, %c0_9] : memref<1x1x8xi32, #tpu.memory_space<vmem>>, vector<1x1x8xi32>
    %10 = vector.shape_cast %9 : vector<1x1x8xi32> to vector<1x8xi32>
    %c0_i32 = arith.constant 0 : i32
    %11 = vector.broadcast %c0_i32 : i32 to vector<1x8xi32>
    %12 = arith.cmpi eq, %10, %11 : vector<1x8xi32>
    %cst_10 = arith.constant -1.000000e+04 : f32
    %cst_11 = arith.constant 0.000000e+00 : f32
    %13 = vector.broadcast %cst_10 : f32 to vector<1x8xf32>
    %14 = vector.broadcast %cst_11 : f32 to vector<1x8xf32>
    %15 = arith.select %12, %13, %14 : vector<1x8xi1>, vector<1x8xf32>
    %16 = vector.shape_cast %15 : vector<1x8xf32> to vector<1x1x8xf32>
    %17 = vector.broadcast %16 : vector<1x1x8xf32> to vector<4x1x8xf32>
    %18 = arith.addf %8, %17 : vector<4x1x8xf32>
    %cst_12 = arith.constant dense<0xFF800000> : vector<4x1xf32>
    %19 = vector.multi_reduction <maximumf>, %18, %cst_12 [2] : vector<4x1x8xf32> to vector<4x1xf32>
    %20 = vector.shape_cast %19 : vector<4x1xf32> to vector<4x1x1xf32>
    %21 = vector.broadcast %20 : vector<4x1x1xf32> to vector<4x1x8xf32>
    %22 = arith.subf %18, %21 : vector<4x1x8xf32>
    %23 = math.exp %22 : vector<4x1x8xf32>
    %cst_13 = arith.constant dense<0.000000e+00> : vector<4x1xf32>
    %24 = vector.multi_reduction <add>, %23, %cst_13 [2] : vector<4x1x8xf32> to vector<4x1xf32>
    %25 = vector.shape_cast %24 : vector<4x1xf32> to vector<4x1x1xf32>
    %26 = tpu.reciprocal %25 {approx = true} : vector<4x1x1xf32> -> vector<4x1x1xf32>
    %27 = vector.broadcast %26 : vector<4x1x1xf32> to vector<4x1x8xf32>
    %28 = arith.mulf %23, %27 : vector<4x1x8xf32>
    %29 = tpu.transpose %28, [1, 0, 2] : vector<4x1x8xf32> -> vector<1x4x8xf32>
    %c0_14 = arith.constant 0 : index
    %c0_15 = arith.constant 0 : index
    %c0_16 = arith.constant 0 : index
    %30 = vector.load %arg6[%c0_14, %c0_15, %c0_16] : memref<1x4x8xf32, #tpu.memory_space<vmem>>, vector<1x4x8xf32>
    tpu.vector_store %arg6[%c0_14, %c0_15, %c0_16], %29 {strides = array<i32>} : memref<1x4x8xf32, #tpu.memory_space<vmem>>, vector<1x4x8xf32>,
    %31 = arith.truncf %29 : vector<1x4x8xf32> to vector<1x4x8xbf16>
    "tpu.trace_start"() <{level = 10 : i32, message = "bhs,bsd->bhd"}> : () -> ()
    %cst_17 = arith.constant dense<0.000000e+00> : vector<1x4x32xf32>
    %32 = tpu.matmul %31, %0, %cst_17 {dimension_numbers = #tpu.dot_dimension_numbers<[2], [1], [1], [2], [0, 0, 0, 1, 1, 2], [0], [0]>} : vector<1x4x8xbf16>, vector<1x8x32xbf16>, vector<1x4x32xf32> -> vector<1x4x32xf32>
    "tpu.trace_stop"() : () -> ()
    %c0_18 = arith.constant 0 : index
    %c0_19 = arith.constant 0 : index
    %c0_20 = arith.constant 0 : index
    %33 = vector.load %arg5[%c0_18, %c0_19, %c0_20] : memref<1x4x32xf32, #tpu.memory_space<vmem>>, vector<1x4x32xf32>
    tpu.vector_store %arg5[%c0_18, %c0_19, %c0_20], %32 {strides = array<i32>} : memref<1x4x32xf32, #tpu.memory_space<vmem>>, vector<1x4x32xf32>,
    return
  }
  func.func @transform_0(%arg0: i32) -> (i32, i32, i32) {
    %c0_i32 = arith.constant 0 : i32
    %c0_i32_0 = arith.constant 0 : i32
    %c0_i32_1 = arith.constant 0 : i32
    return %arg0, %c0_i32, %c0_i32_0 : i32, i32, i32
  }
  func.func @transform_1(%arg0: i32) -> (i32, i32, i32) {
    %c0_i32 = arith.constant 0 : i32
    %c0_i32_0 = arith.constant 0 : i32
    %c0_i32_1 = arith.constant 0 : i32
    return %arg0, %c0_i32, %c0_i32_0 : i32, i32, i32
  }
  func.func @transform_2(%arg0: i32) -> (i32, i32) {
    %c0_i32 = arith.constant 0 : i32
    %c0_i32_0 = arith.constant 0 : i32
    %c0_i32_1 = arith.constant 0 : i32
    return %c0_i32, %c0_i32_0 : i32, i32
  }
  func.func @transform_3(%arg0: i32) -> (i32, i32) {
    %c0_i32 = arith.constant 0 : i32
    %c0_i32_0 = arith.constant 0 : i32
    %c0_i32_1 = arith.constant 0 : i32
    return %c0_i32, %c0_i32_0 : i32, i32
  }
  func.func @transform_4(%arg0: i32) -> (i32, i32, i32) {
    %c0_i32 = arith.constant 0 : i32
    %c0_i32_0 = arith.constant 0 : i32
    %c0_i32_1 = arith.constant 0 : i32
    return %arg0, %c0_i32, %c0_i32_0 : i32, i32, i32
  }
  func.func @transform_5(%arg0: i32) -> (i32, i32, i32) {
    %c0_i32 = arith.constant 0 : i32
    %c0_i32_0 = arith.constant 0 : i32
    %c0_i32_1 = arith.constant 0 : i32
    return %arg0, %c0_i32, %c0_i32_0 : i32, i32, i32
  }
}

</mosaic_0001>

<bundles_post_ra>
// kernel: tpu_custom_call.1
= control target key start
LH: loop header
LB: loop body
LE: loop exit
PB: predicated region body
PF: predicated region fallthrough
CT: control target
= control target key end

     0   :  { %11 = vsyncpa [#allocation3], 0  ;;  %s1061_s0 = inlined_call_operand.vmem [shape: s32[2,1,8], index: 0, kind: input, shape index: {}]   ;;  %s1062_s1 = inlined_call_operand.vmem [shape: bf16[2,8,32], index: 1, kind: input, shape index: {}]   ;;  %s1063_s2 = inlined_call_operand.vmem [shape: bf16[32,16], index: 2, kind: input, shape index: {}]   ;;  %s1064_s3 = inlined_call_operand.vmem [shape: bf16[4,16], index: 3, kind: input, shape index: {}]   ;;  %s1065_s4 = inlined_call_operand.hbm [shape: f32[2,4,32], index: 4, kind: output, shape index: {0}]   ;;  %s1066_s5 = inlined_call_operand.hbm [shape: f32[2,4,8], index: 5, kind: output, shape index: {1}]  }
   0x1   :  { %13 = vsyncpa [#allocation3 + $0x1], 0 }
   0x2   :  { %14 = vsyncpa [#allocation5], 0 }
   0x3   :  { %16 = vsyncpa [#allocation5 + $0x1], 0  ;;  %s894_s18 = smov 0   ;;  %s896_s19 = smov 0  }
   0x4   :  { %s898_s20 = smov 0   ;;  %s900_s21 = smov 0  }
   0x5 LB: > { %s915_s22 = sadd.s32 4294967295, %s857_s21   ;;  %s651_s23 = sadd.s32 4294967294, %s857_s21   ;;  %s857_s21 = sphi %s900_s21, %s1072_s21   ;;  %s853_s20 = sphi %s898_s20, %s1071_s20   ;;  %s849_s19 = sphi %s896_s19, %s1070_s19   ;;  %s845_s18 = sphi %s894_s18, %s1069_s18  }
   0x6   : > { %s919_s24 = sadd.s32 1, %s857_s21   ;;  %s123_s25 = sadd.s32 1, %s853_s20 }
   0x7   : > { %s120_s26 = ssub.s32 %s857_s21, %s919_s24  ;;  %p133_p0 = scmp.ne.s32.totalorder %s853_s20, %s849_s19 }
   0x8   : > { %p121_p1 = scmp.eq.s32.totalorder %s120_s26, 0  ;;  %p134_p2 = scmp.eq.s32.totalorder %s915_s22, 1 }
   0x9   : > { %p139_p3 = scmp.ne.s32.totalorder %s849_s19, %s845_s18  ;;  %p140_p4 = scmp.eq.s32.totalorder %s651_s23, 1 }
   0xa   : > { %s930_s27 = scalar_select %p121_p1, %s853_s20, %s123_s25  }
   0xb   : > { %p932_p5 = por %p134_p2, %p133_p0  ;;  %p936_p6 = por %p140_p4, %p139_p3 }
   0xc   : > { %p654_p7 = scmp.ge.s32.totalorder %s857_s21, 1  ;;  %p203_p8 = scmp.lt.s32.totalorder %s857_s21, 3 }
   0xe   : > { %p204_p9 = pnand %p654_p7, %p203_p8 }
   0xf   : > { %v743_v0 = vld [vmem:[%s1063_s2] sm:$0xff] (!%p204_p9)   ;;  %v859_v1 = vmov (!%p204_p9), 0.0   ;;  %v744_v2 = vld [vmem:[%s1063_s2 + $0x8] sm:$0xff] (!%p204_p9)   ;;  %vm860_vm0 = vmmov (!%p204_p9), 0   ;;  %p238_p10 = scmp.lt.s32.totalorder (!%p204_p9), %s915_s22, 1  ;;  %vm263_vm1 = vcmask (!%p204_p9), 261120   ;;  %v361_v14 = vlaneseq (!%p204_p9) }
  0x10   : > { %207 = sbr.rel (%p204_p9) target bundleno = 1038 (0x40e), region = 36  ;;  %676 = vmatprep.subr.bf16.mxu0 (!%p204_p9), %v859_v1  ;;  %684 = vmatprep.subr.bf16.mxu1 (!%p204_p9), %v859_v1  ;;  %vm310_vm2 = vcmask (!%p204_p9), 130048   ;;  %v308_v11 = vld [vmem:[%s1064_s3] sm:$0x3] (!%p204_p9)  ;;  %v861_v12 = vmov (!%p204_p9), 1966171168  }
  0x11   : > { %677 = vmatpush3.bf16.msra.mxu0 (!%p204_p9), %v743_v0  ;;  %680 = vmatprep.mubr.msk.bf16.mxu0 (!%p204_p9), %vm860_vm0, %v859_v1  ;;  %v359_v13 = vunpack.c.l.s4 (!%p204_p9), %v861_v12  ;;  %v362_v16 = vshrl.u32 (!%p204_p9), %v361_v14, 7  ;;  %vm393_vm4 = vcmask (!%p204_p9), 57344   ;;  %vm474_vm5 = vcmask (!%p204_p9), 1043456   ;;  %s977_s25 = sand.u32 (!%p204_p9), 1, %s849_s19   ;;  %s665_s6 = sshll.u32 (!%p204_p9), %s915_s22, 6 }
  0x12   : > { %678 = vmatprep.subr.bf16.mxu0 (!%p204_p9), %v859_v1  ;;  %686 = vmatprep.mubr.msk.bf16.mxu1 (!%p204_p9), %vm860_vm0, %v859_v1  ;;  %s655_s26 = sshll.u32 (!%p204_p9), %s977_s25, 2  ;;  %vm467_vm6 = vcmask (!%p204_p9), 60416   ;;  %vm470_vm7 = vcmask (!%p204_p9), 64512   ;;  %s525_s11 = scalar_lea.sflag (!%p204_p9), [#allocation5], %s977_s25 }
  0x13   : > { %v360_v15 = vunpack.c.0.s8 (!%p204_p9), %v359_v13  ;;  %s237_s30 = scalar_lea.vmem (!%p204_p9), [#allocation4], %s655_s26 }
  0x15   : > { %679 = vmatpush3.bf16.msra.mxu0 (!%p204_p9), %v744_v2  ;;  %v962_v18 = vsub.s32 (!%p204_p9), %v360_v15, %v362_v16 }
  0x16   : > { %690 = vmatprep.subr.bf16.mxu0 (!%p204_p9), %v859_v1 }
  0x17   : > { %s239_s9 = scalar_select %p238_p10, %s915_s22, 1 }
  0x19   : > { %s657_s10 = sshll.u32 %s239_s9, 2  ;;  %s240_s23 = scalar_lea.vmem %s1061_s0, %s239_s9 }
  0x1a   : > { %s244_s13 = scalar_lea.vmem %s1062_s1, %s657_s10  ;;  %v386_v17 = vld [vmem:[%s240_s23] sm:$0x1]  ;;  %s991_s9 = scalar_lea.hbm %s1066_s5, %s665_s6 }
  0x1b   : > { %v953_v3 = vld [vmem:[%s244_s13] sm:$0xf]  ;;  %vm387_vm3 = vcmp.eq.s32.totalorder %v386_v17, 0  ;;  %s551_s10 = sshll.u32 %s237_s30, 4  ;;  %s862_s13 = smov [#allocation4]   ;;  %s552_s10 = int_to_ptr.vmem [resolvable:$true] %s551_s10 }
  0x1c   : > { %681 = vmatmul.mubr.msk.bf16.vlgmr.msra.gmra.mrb[0].mxu0 %vm263_vm1, %v953_v3  ;;  %v388_v23 = vsel %vm387_vm3, -10000.0, %v859_v1  ;;  %v475_v58 = vsel %vm474_vm5, %v953_v3, 0  ;;  %s763_s12 = scalar_lea.vmem %s552_s10, 64  ;;  %s767_s14 = sshll.u32 %s862_s13, 4  ;;  %s768_s14 = int_to_ptr.vmem [resolvable:$false] %s767_s14 }
  0x1d   : > { %692 = vmatprep.mubr.msk.bf16.mxu0 %vm860_vm0, %v859_v1  ;;  %691 = vmatpush3.bf16.msra.mxu0 %v475_v58  ;;  %p764_p11 = scmp.ne.s32.totalorder %s552_s10, %s763_s12  ;;  %s769_s15 = scalar_lea.vmem %s768_s14, 128 }
  0x1e   : > { %p770_p0 = scmp.lt.s32.totalorder %s552_s10, %s768_s14  ;;  %p771_p1 = scmp.lt.s32.totalorder %s769_s15, %s763_s12 }
  0x1f   : > { %p765_p12 = pnand %p764_p11, %p932_p5 }
  0x20   : > { %p772_p2 = por %p771_p1, %p770_p0 }
  0x21   : > { %p766_p13 = pneg %p765_p12 }
  0x23   : > { %p773_p3 = pnand %p772_p2, %p766_p13 }
  0xef   : > { %v301_v4 = vpop.f32.mrb[0].mxu0 }
  0xf0   : > { %745 = vtanh.f32 %v301_v4  ;;  %v682_v5 = vpop.f32.mrb[1].mxu0 }
  0xf1   : > { %v304_v6 = vpop.f32.mrb[2].mxu0 }
  0xf2   : > { %v683_v7 = vpop.f32.mrb[3].mxu0 }
  0xfa   : > { %v746_v8 = vpop.eup %745 }
  0xfb   : > { %v309_v9 = vpack.c.bf16 %v746_v8, %v746_v8 }
  0xfd   : > { %v315_v10 = vsel %vm310_vm2, %v309_v9, 0 }
  0xfe   : > { %685 = vmatpush3.bf16.xpose.msra.mxu1 %v315_v10 }
 0x105   : > { %687 = vmatmul.mubr.msk.bf16.vlgmr.msra.gmra.mrb[0].mxu1 %vm310_vm2, %v308_v11 }
 0x1d8   : > { %v351_v19 = vpop.f32.mrb[0].mxu1 }
 0x1d9   : > { %v364_v20 = vrot.slane %v351_v19, %v962_v18  ;;  %v688_v21 = vpop.f32.mrb[1].mxu1 }
 0x1da   : > { %v354_v22 = vpop.f32.mrb[2].mxu1 }
 0x1db   : > { %v365_v24 = vcombine.high %v364_v20, %v364_v20  ;;  %v372_v25 = vrot.slane %v364_v20, %v962_v18  ;;  %v689_v26 = vpop.f32.mrb[3].mxu1 }
 0x1dd   : > { %v389_v27 = vadd.f32 %v388_v23, %v372_v25  ;;  %v380_v28 = vcombine.high %v372_v25, %v372_v25  ;;  %v379_v29 = vrot.slane %v365_v24, %v962_v18 }
 0x1df   : > { %v394_v30 = vsel %vm393_vm4, %v389_v27, -inf  ;;  %v391_v31 = vadd.f32 %v388_v23, %v380_v28  ;;  %v390_v32 = vadd.f32 %v388_v23, %v379_v29  ;;  %v381_v33 = vcombine.high %v379_v29, %v379_v29 }
 0x1e0   : > { %395 = vmax.xlane.f32.xlu0 %v394_v30 }
 0x1e1   : > { %v400_v34 = vsel %vm393_vm4, %v391_v31, -inf  ;;  %v392_v35 = vadd.f32 %v388_v23, %v381_v33  ;;  %v397_v36 = vsel %vm393_vm4, %v390_v32, -inf }
 0x1e2   : > { %401 = vmax.xlane.f32.xlu1 %v400_v34 }
 0x1e3   : > { %v403_v37 = vsel %vm393_vm4, %v392_v35, -inf }
 0x1e4   : > { %398 = vmax.xlane.f32.xlu0 %v397_v36 }
 0x1e6   : > { %404 = vmax.xlane.f32.xlu1 %v403_v37 }
 0x26d   : > { %v396_v38 = vpop.xlane.xlu0 %395 }
 0x26e   : > { %v406_v39 = vsub.f32 %v389_v27, %v396_v38 }
 0x26f   : > { %v402_v40 = vpop.xlane.xlu1 %401 }
 0x270   : > { %v410_v41 = vmul.f32 1.442695, %v406_v39  ;;  %v408_v42 = vsub.f32 %v391_v31, %v402_v40 }
 0x271   : > { %v399_v43 = vpop.xlane.xlu0 %398 }
 0x272   : > { %747 = vpow2.f32 %v410_v41  ;;  %v414_v44 = vmul.f32 1.442695, %v408_v42  ;;  %v407_v45 = vsub.f32 %v390_v32, %v399_v43 }
 0x273   : > { %v405_v46 = vpop.xlane.xlu1 %404 }
 0x274   : > { %749 = vpow2.f32 %v414_v44  ;;  %v412_v47 = vmul.f32 1.442695, %v407_v45  ;;  %v409_v48 = vsub.f32 %v392_v35, %v405_v46 }
 0x276   : > { %751 = vpow2.f32 %v412_v47  ;;  %v416_v49 = vmul.f32 1.442695, %v409_v48 }
 0x278   : > { %753 = vpow2.f32 %v416_v49 }
 0x27c   : > { %v748_v50 = vpop.eup %747 }
 0x27d   : > { %v418_v51 = vsel %vm393_vm4, %v748_v50, 0.0 }
 0x27e   : > { %v750_v52 = vpop.eup %749  ;;  %419 = vadd.xlane.f32.xlu0 %v418_v51 }
 0x27f   : > { %v424_v54 = vsel %vm393_vm4, %v750_v52, 0.0 }
 0x280   : > { %v752_v53 = vpop.eup %751 }
 0x281   : > { %v421_v55 = vsel %vm393_vm4, %v752_v53, 0.0 }
 0x282   : > { %v754_v56 = vpop.eup %753  ;;  %425 = vadd.xlane.f32.xlu0 %v424_v54  ;;  %422 = vadd.xlane.f32.xlu1 %v421_v55 }
 0x283   : > { %v427_v57 = vsel %vm393_vm4, %v754_v56, 0.0 }
 0x286   : > { %428 = vadd.xlane.f32.xlu1 %v427_v57 }
 0x30b   : > { %v420_v59 = vpop.xlane.xlu0 %419 }
 0x30c   : > { %755 = vrcp.f32 %v420_v59 }
 0x30f   : > { %v423_v60 = vpop.xlane.xlu1 %422  ;;  %v426_v61 = vpop.xlane.xlu0 %425 }
 0x310   : > { %757 = vrcp.f32 %v423_v60 }
 0x311   : > { %759 = vrcp.f32 %v426_v61 }
 0x313   : > { %v429_v62 = vpop.xlane.xlu1 %428 }
 0x314   : > { %761 = vrcp.f32 %v429_v62 }
 0x316   : > { %v756_v63 = vpop.eup %755 }
 0x317   : > { %v434_v4 = vmul.f32 %v756_v63, %v748_v50 }
 0x31a   : > { %v758_v0 = vpop.eup %757 }
 0x31b   : > { %v435_v1 = vmul.f32 %v758_v0, %v752_v53  ;;  %v760_v2 = vpop.eup %759 }
 0x31c   : > { %v436_v7 = vmul.f32 %v760_v2, %v750_v52 }
 0x31d   : > { %v442_v6 = vcombine.low %v434_v4, %v435_v1 }
 0x31e   : > { %v762_v5 = vpop.eup %761 }
 0x31f   : > { %v437_v3 = vmul.f32 %v762_v5, %v754_v56  ;;  %v450_v9 = vrot.slane %v442_v6, %v962_v18 }
 0x321   : > { %v443_v8 = vcombine.low %v436_v7, %v437_v3 }
 0x323   : > { %v457_v10 = vrot.slane %v443_v8, %v962_v18 }
 0x325   : > { %v458_v11 = vcombine.low %v450_v9, %v457_v10 }
 0x327   : > { %v465_v12 = vrot.slane %v458_v11, %v962_v18 }
 0x329   : > { %v469_v13 = vpack.c.bf16 %v465_v12, %v465_v12  ;;  %468 = vst.msk [vmem:[%s237_s30] sm:$0xf] %vm467_vm6, %v465_v12 }
 0x32b   : > { %693 = vmatmul.mubr.msk.bf16.vlgmr.msra.gmra.mrb[4].mxu0 %vm470_vm7, %v469_v13 }
 0x32c   : > { %776 = shalt.err (!%p773_p3)
}
 0x32d   : > { %s777_s16 = scalar_lea.hbm %s991_s9, 64  ;;  %s781_s30 = scalar_lea.hbm %s1066_s5, 128 }
 0x32e   : > { %p778_p4 = scmp.ne.s32.totalorder %s991_s9, %s777_s16  ;;  %p782_p9 = scmp.lt.u32.totalorder %s991_s9, %s1066_s5 }
 0x32f   : > { %p783_p10 = scmp.lt.u32.totalorder %s781_s30, %s777_s16  ;;  %p785_p12 = scmp.lt.u32.totalorder %s777_s16, %s991_s9 }
 0x330   : > { %p779_p7 = pnand %p778_p4, %p932_p5 }
 0x331   : > { %p784_p11 = por %p783_p10, %p782_p9 }
 0x332   : > { %p780_p8 = pneg %p779_p7 }
 0x333   : > { %p786_p13 = por %p785_p12, %p784_p11 }
 0x335   : > { %p787_p0 = pnand %p786_p13, %p780_p8 }
 0x337   : > { %790 = shalt.err (!%p787_p0)
}
 0x338   : > { %697 = dma.vmem_to_hbm [thread:$0]  (%p932_p5), %s552_s10, 64, %s991_s9, %s525_s11   ;;  %vm517_vm8 = vcmask 257024  }
 0x339   : > { %s230_s12 = scalar_lea.vmem [#allocation2], %s655_s26  ;;  %s1018_s16 = scalar_lea.hbm %s1065_s4, %s665_s6 }
 0x33a   : > { %s538_s13 = sshll.u32 %s230_s12, 4  ;;  %s520_s9 = scalar_lea.sflag [#allocation3], %s977_s25  ;;  %s1020_s13 = int_to_ptr.vmem [resolvable:$true] %s538_s13 }
 0x33b   : > { %s791_s10 = scalar_lea.vmem %s1020_s13, 64  ;;  %s863_s22 = smov [#allocation2]  }
 0x33c   : > { %p792_p1 = scmp.ne.s32.totalorder %s1020_s13, %s791_s10  ;;  %s795_s26 = sshll.u32 %s863_s22, 4  ;;  %s796_s26 = int_to_ptr.vmem [resolvable:$false] %s795_s26 }
 0x33d   : > { %s797_s6 = scalar_lea.vmem %s796_s26, 128  ;;  %p798_p4 = scmp.lt.s32.totalorder %s1020_s13, %s796_s26 }
 0x33e   : > { %p793_p2 = pnand %p792_p1, %p932_p5  ;;  %p799_p7 = scmp.lt.s32.totalorder %s797_s6, %s791_s10 }
 0x340   : > { %p794_p3 = pneg %p793_p2  ;;  %p800_p8 = por %p799_p7, %p798_p4 }
 0x342   : > { %p801_p9 = pnand %p800_p8, %p794_p3 }
 0x3fe   : > { %v511_v14 = vpop.f32.mrb[4].mxu0 }
 0x3ff   : > { %518 = vst.msk [vmem:[%s230_s12] sm:$0xf] %vm517_vm8, %v511_v14  ;;  %v694_v15 = vpop.f32.mrb[5].mxu0 }
 0x400   : > { %v514_v16 = vpop.f32.mrb[6].mxu0 }
 0x401   : > { %804 = shalt.err (!%p801_p9)
}
 0x402   : > { %s805_s25 = scalar_lea.hbm %s1018_s16, 64  ;;  %s809_s23 = scalar_lea.hbm %s1065_s4, 128 }
 0x403   : > { %p806_p10 = scmp.ne.s32.totalorder %s1018_s16, %s805_s25  ;;  %p810_p13 = scmp.lt.u32.totalorder %s1018_s16, %s1065_s4 }
 0x404   : > { %p811_p0 = scmp.lt.u32.totalorder %s809_s23, %s805_s25  ;;  %p813_p2 = scmp.lt.u32.totalorder %s805_s25, %s1018_s16 }
 0x405   : > { %p807_p11 = pnand %p806_p10, %p932_p5 }
 0x406   : > { %p812_p1 = por %p811_p0, %p810_p13 }
 0x407   : > { %p808_p12 = pneg %p807_p11 }
 0x408   : > { %p814_p3 = por %p813_p2, %p812_p1 }
 0x40a   : > { %p815_p4 = pnand %p814_p3, %p808_p12 }
 0x40c   : > { %818 = shalt.err (!%p815_p4)
}
 0x40d   : > { %696 = dma.vmem_to_hbm [thread:$0]  (%p932_p5), %s1020_s13, 64, %s1018_s16, %s520_s9   ;;  %v695_v17 = vpop.f32.mrb[7].mxu0 }
 0x40e PF: > { %p707_p7 = scmp.ge.s32.totalorder %s857_s21, 2  ;;  %s563_s8 = sand.u32 1, %s845_s18  }
 0x40f   : > { %s564_s12 = scalar_lea.sflag [#allocation3], %s563_s8 }
 0x410   : > { %p701_p8 = pnand %p707_p7, %p936_p6 }
 0x412   : > { %836 = dma.done.wait (!%p701_p8), %s564_s12, 64  }
 0x413   : > { %838 = vsyncadd (!%p701_p8), %s564_s12, 4294967232  ;;  %s573_s14 = scalar_lea.sflag [#allocation5], %s563_s8 }
 0x414   : > { %840 = dma.done.wait (!%p701_p8), %s573_s14, 64  }
 0x415   : > { %842 = vsyncadd (!%p701_p8), %s573_s14, 4294967232  ;;  %p19_p5 = scmp.ge.s32.totalorder %s919_s24, 4   ;;  %s1069_s18 = smov %s849_s19 }
 0x416   : > { %s1070_s19 = smov %s853_s20  ;;  %s1071_s20 = smov %s930_s27 }
 0x417   : > { %s1072_s21 = smov %s919_s24  ;;  %21 = sbr.rel (!%p19_p5) target bundleno = 5 (0x5), region = 91 }
 0x41e   :  { %578 = vsyncpa [#allocation3], 1 }
 0x41f   :  { %580 = vsyncpa [#allocation3 + $0x1], 1 }
 0x420   :  { %581 = vsyncpa [#allocation5], 1 }
 0x421   :  { %583 = vsyncpa [#allocation5 + $0x1], 1 }

</bundles_post_ra>
